<compile_context>
chip_gen: v7x
topology: tpu7x:2x2x1
jax: 0.10.0
libtpu: 0.0.40
codegen_flags: <defaults>
</compile_context>

<pallas_src>
import jax
import jax.numpy as jnp
from jax.experimental import pallas as pl
from jax.experimental.pallas import tpu as pltpu


def _round_up(v, m):
    return ((v + m - 1) // m) * m


def policy_p1_kernel(xt_ref, w1t_ref, nb1_ref, w2dT_ref, b2d_ref, p1_ref):
    """One batch tile. Shapes inside a grid step (TB = batch tile, on lanes):
      xt_ref  : (S, TB)  bf16   states, batch on the 128-wide lane axis
      w1t_ref : (H, S)   bf16   layer-1 weight (VMEM-resident across steps)
      nb1_ref : (H, 1)   f32    -b1 (bias folded into the ReLU max)
      w2dT_ref: (8, H)   bf16   row 0 = w2[:,1]-w2[:,0]; rows 1..7 zero padding
      b2d_ref : (1, 1)   f32    (b2[1]-b2[0]) + (w2[:,1]-w2[:,0]) . b1
      p1_ref  : (1, TB)  f32    P(action = 1)
    """
    # ----- Layer 1 on the MXU: (H,S) @ (S,TB) -> (H,TB), f32 accumulation. -----
    h = jnp.dot(w1t_ref[...], xt_ref[...], preferred_element_type=jnp.float32)

    # ReLU with the bias folded:  relu(h + b1) = max(h, -b1) + b1.
    # The constant "+ b1" contribution is linear through layer 2 and was added
    # into b2d in the wrapper, so only the max remains here (one VPU pass).
    h = jnp.maximum(h, nb1_ref[...])

    # ----- Layer 2 + 2-class softmax == sigmoid of the logit difference, MXU. --
    # w2dT is zero-padded to 8 rows so the matmul M-dim is sublane-aligned.
    d8 = jnp.dot(w2dT_ref[...], h.astype(w2dT_ref.dtype),
                 preferred_element_type=jnp.float32)            # (8, TB); row 0 real
    d = d8[0:1, :] + b2d_ref[...]                               # (1, TB)

    # sigmoid(d) = 1 / (1 + exp(-d)): exp and approx reciprocal both on the EUP,
    # keeping the VALU slot free.  p0 = 1 - p1 is reconstructed in the wrapper.
    p1_ref[...] = pl.reciprocal(1.0 + jnp.exp(-d), approx=True)


def prepare_policy_params(w1, b1, w2, b2):
    """One-time parameter repack (hoist out of the rollout loop for repeated calls)."""
    w1 = jnp.asarray(w1, jnp.float32)
    b1 = jnp.asarray(b1, jnp.float32)
    w2 = jnp.asarray(w2, jnp.float32)
    b2 = jnp.asarray(b2, jnp.float32)
    state_dim, hidden = w1.shape
    assert w2.shape == (hidden, 2), "kernel specialized to CartPole's 2 actions"
    w2d = w2[:, 1] - w2[:, 0]                                       # (H,)
    w2dT8 = jnp.zeros((8, hidden), jnp.float32).at[0].set(w2d)      # MXU-friendly M=8
    return {
        "w1t": w1.T.astype(jnp.bfloat16),                           # (H, S)
        "nb1": (-b1).reshape(hidden, 1),                            # (H, 1) f32
        "w2dT": w2dT8.astype(jnp.bfloat16),                         # (8, H)
        "b2d": (b2[1] - b2[0] + jnp.sum(w2d * b1)).reshape(1, 1),   # folded bias, f32
    }


def _pick_tile(batch, requested_tile):
    b_ceil = _round_up(max(int(batch), 1), 128)
    tile = max(128, min(int(requested_tile), 8192))   # VMEM cap (safe for v7x's 64 MiB)
    tile = (tile // 128) * 128                        # batch lives on lanes
    tile = min(tile, b_ceil)
    # v7x megacore: keep >= 2 grid steps when the batch allows it so the
    # "parallel" axis can split across both TensorCores (no-op on v5e/v6e).
    if b_ceil >= 256:
        tile = min(tile, _round_up(b_ceil // 2, 128))
    b_pad = _round_up(int(batch), tile)
    return tile, b_pad


def policy_p1_transposed(xt, params, *, tile_b=8192):
    """xt: (state_dim, B) with the batch on the fast axis. Returns p1: (B,) f32.
    Use this entry point directly to avoid any wrapper-side x transpose."""
    state_dim, batch = xt.shape
    hidden = params["w1t"].shape[0]
    tile, b_pad = _pick_tile(batch, tile_b)

    xt = xt.astype(jnp.bfloat16)
    if b_pad != batch:
        xt = jnp.pad(xt, ((0, 0), (0, b_pad - batch)))  # padded cols sliced off below

    p1 = pl.pallas_call(
        policy_p1_kernel,
        out_shape=jax.ShapeDtypeStruct((1, b_pad), jnp.float32),
        grid_spec=pltpu.PrefetchScalarGridSpec(
            num_scalar_prefetch=0,
            grid=(b_pad // tile,),
            in_specs=[
                pl.BlockSpec((state_dim, tile), lambda i: (0, i)),    # x tile (streamed)
                pl.BlockSpec((hidden, state_dim), lambda i: (0, 0)),  # params: VMEM-resident
                pl.BlockSpec((hidden, 1), lambda i: (0, 0)),
                pl.BlockSpec((8, hidden), lambda i: (0, 0)),
                pl.BlockSpec((1, 1), lambda i: (0, 0)),
            ],
            out_specs=pl.BlockSpec((1, tile), lambda i: (0, i)),      # lane-dense p1 row
        ),
        compiler_params=pltpu.CompilerParams(
            dimension_semantics=("parallel",),           # megacore-shard batch tiles
            vmem_limit_bytes=32 * 1024 * 1024,           # safe on v5e/v6e/v7x
        ),
    )(xt, params["w1t"], params["nb1"], params["w2dT"], params["b2d"])
    return p1[0, :batch]


def reference_forward(x, w1, b1, w2, b2):
    """Plain fused XLA forward (also the small-batch fallback); HIGHEST precision
    so it is a true f32 reference on TPU."""
    h = jnp.maximum(jnp.dot(x, w1, precision=jax.lax.Precision.HIGHEST) + b1, 0.0)
    logits = jnp.dot(h, w2, precision=jax.lax.Precision.HIGHEST) + b2
    return jax.nn.softmax(logits, axis=-1)


def policy_network_forward(x, w1, b1, w2, b2, *, tile_b=8192, use_pallas=None,
                           min_pallas_batch=2048):
    """PolicyNetwork.forward: x (B, state_dim) -> softmax probs (B, 2)."""
    batch = x.shape[0]
    if use_pallas is None:
        # At small batch a single grid step is dominated by launch + fixed DMA
        # cost plus layout plumbing; plain XLA wins there.
        use_pallas = batch >= min_pallas_batch
    if not use_pallas:
        return reference_forward(x, w1, b1, w2, b2)

    params = prepare_policy_params(w1, b1, w2, b2)  # hoist for repeated calls
    # Cast before transposing so the (B,S)->(S,B) relayout moves bf16, not f32.
    xt = jnp.asarray(x, jnp.float32).astype(jnp.bfloat16).T
    p1 = policy_p1_transposed(xt, params, tile_b=tile_b)
    # p0 = 1 - p1 assembled outside the kernel: rows sum to 1 exactly.
    return jnp.stack([1.0 - p1, p1], axis=-1)


if __name__ == "__main__":
    # CartPole-v1: state_dim=4, action_dim=2
    state_dim, hidden, action_dim = 4, 128, 2
    batch = 8

    key = jax.random.PRNGKey(0)
    kx, k1, kb1, k2, kb2, kx2 = jax.random.split(key, 6)

    x = jax.random.normal(kx, (batch, state_dim), dtype=jnp.float32)
    w1 = jax.random.normal(k1, (state_dim, hidden), dtype=jnp.float32) * 0.1
    b1 = jax.random.normal(kb1, (hidden,), dtype=jnp.float32) * 0.1
    w2 = jax.random.normal(k2, (hidden, action_dim), dtype=jnp.float32) * 0.1
    b2 = jax.random.normal(kb2, (action_dim,), dtype=jnp.float32) * 0.1

    ref = reference_forward(x, w1, b1, w2, b2)

    # 1) Pallas kernel path (forced, since B=8 is below the auto threshold).
    #    bf16 MXU inputs with f32 accumulation -> compare at bf16-level tolerance.
    out = policy_network_forward(x, w1, b1, w2, b2, use_pallas=True)
    out = jax.block_until_ready(out)
    assert out.shape == (batch, action_dim)
    assert jnp.allclose(out, ref, atol=5e-3, rtol=0.0)
    assert jnp.allclose(jnp.sum(out, axis=-1), jnp.ones((batch,)), atol=1e-6)

    # 2) Multi-step grid with batch padding (B=300, tile 128 -> 3 grid steps).
    xb = jax.random.normal(kx2, (300, state_dim), dtype=jnp.float32)
    refb = reference_forward(xb, w1, b1, w2, b2)
    outb = jax.block_until_ready(
        policy_network_forward(xb, w1, b1, w2, b2, use_pallas=True, tile_b=128))
    assert outb.shape == (300, action_dim)
    assert jnp.allclose(outb, refb, atol=5e-3, rtol=0.0)
    assert jnp.allclose(jnp.sum(outb, axis=-1), jnp.ones((300,)), atol=1e-6)

    # 3) Small-batch auto path falls back to the fused XLA forward.
    out_small = jax.block_until_ready(policy_network_forward(x, w1, b1, w2, b2))
    assert out_small.shape == (batch, action_dim)
    assert jnp.allclose(out_small, ref, atol=1e-5, rtol=1e-5)

    print("KERNEL_OK")
</pallas_src>

<mosaic_0001>
module attributes {stable_mosaic.version = 11 : i64} {
  func.func @policy_p1_kernel(%arg0: i32, %arg1: memref<4x128xbf16, #tpu.memory_space<vmem>>, %arg2: memref<128x4xbf16, #tpu.memory_space<vmem>>, %arg3: memref<128x1xf32, #tpu.memory_space<vmem>>, %arg4: memref<8x128xbf16, #tpu.memory_space<vmem>>, %arg5: memref<1x1xf32, #tpu.memory_space<vmem>>, %arg6: memref<1x128xf32, #tpu.memory_space<vmem>>) attributes {dimension_semantics = [#tpu.dimension_semantics<parallel>], iteration_bounds = array<i64: 1>, scalar_prefetch = 0 : i64, scratch_operands = 0 : i64, tpu.core_type = #tpu.core_type<tc>, window_params = [{transform_indices = @transform_0, window_bounds = array<i64: 4, 128>}, {pipeline_mode = #tpu.pipeline_mode<synchronous>, transform_indices = @transform_1, window_bounds = array<i64: 128, 4>}, {pipeline_mode = #tpu.pipeline_mode<synchronous>, transform_indices = @transform_2, window_bounds = array<i64: 128, 1>}, {pipeline_mode = #tpu.pipeline_mode<synchronous>, transform_indices = @transform_3, window_bounds = array<i64: 8, 128>}, {pipeline_mode = #tpu.pipeline_mode<synchronous>, transform_indices = @transform_4, window_bounds = array<i64: 1, 1>}, {transform_indices = @transform_5, window_bounds = array<i64: 1, 128>}]} {
    %c0 = arith.constant 0 : index
    %c0_0 = arith.constant 0 : index
    %0 = vector.load %arg2[%c0, %c0_0] : memref<128x4xbf16, #tpu.memory_space<vmem>>, vector<128x4xbf16>
    %c0_1 = arith.constant 0 : index
    %c0_2 = arith.constant 0 : index
    %1 = vector.load %arg1[%c0_1, %c0_2] : memref<4x128xbf16, #tpu.memory_space<vmem>>, vector<4x128xbf16>
    %cst = arith.constant dense<0.000000e+00> : vector<128x128xf32>
    %2 = tpu.matmul %0, %1, %cst {dimension_numbers = #tpu.dot_dimension_numbers<[1], [0], [0], [1], [0, 0, 1, 1], [], []>} : vector<128x4xbf16>, vector<4x128xbf16>, vector<128x128xf32> -> vector<128x128xf32>
    %c0_3 = arith.constant 0 : index
    %c0_4 = arith.constant 0 : index
    %3 = vector.load %arg3[%c0_3, %c0_4] : memref<128x1xf32, #tpu.memory_space<vmem>>, vector<128x1xf32>
    %4 = vector.broadcast %3 : vector<128x1xf32> to vector<128x128xf32>
    %5 = arith.maximumf %2, %4 : vector<128x128xf32>
    %c0_5 = arith.constant 0 : index
    %c0_6 = arith.constant 0 : index
    %6 = vector.load %arg4[%c0_5, %c0_6] : memref<8x128xbf16, #tpu.memory_space<vmem>>, vector<8x128xbf16>
    %7 = arith.truncf %5 : vector<128x128xf32> to vector<128x128xbf16>
    %cst_7 = arith.constant dense<0.000000e+00> : vector<8x128xf32>
    %8 = tpu.matmul %6, %7, %cst_7 {dimension_numbers = #tpu.dot_dimension_numbers<[1], [0], [0], [1], [0, 0, 1, 1], [], []>} : vector<8x128xbf16>, vector<128x128xbf16>, vector<8x128xf32> -> vector<8x128xf32>
    %9 = vector.extract_strided_slice %8 {offsets = [0, 0], sizes = [1, 128], strides = [1, 1]} : vector<8x128xf32> to vector<1x128xf32>
    %c0_8 = arith.constant 0 : index
    %c0_9 = arith.constant 0 : index
    %10 = vector.load %arg5[%c0_8, %c0_9] : memref<1x1xf32, #tpu.memory_space<vmem>>, vector<1x1xf32>
    %11 = vector.broadcast %10 : vector<1x1xf32> to vector<1x128xf32>
    %12 = arith.addf %9, %11 : vector<1x128xf32>
    %cst_10 = arith.constant 0.000000e+00 : f32
    %13 = vector.broadcast %cst_10 : f32 to vector<1x128xf32>
    %14 = arith.subf %13, %12 : vector<1x128xf32>
    %15 = math.exp %14 : vector<1x128xf32>
    %cst_11 = arith.constant 1.000000e+00 : f32
    %16 = vector.broadcast %cst_11 : f32 to vector<1x128xf32>
    %17 = arith.addf %16, %15 : vector<1x128xf32>
    %18 = tpu.reciprocal %17 {approx = true} : vector<1x128xf32> -> vector<1x128xf32>
    %c0_12 = arith.constant 0 : index
    %c0_13 = arith.constant 0 : index
    %19 = vector.load %arg6[%c0_12, %c0_13] : memref<1x128xf32, #tpu.memory_space<vmem>>, vector<1x128xf32>
    tpu.vector_store %arg6[%c0_12, %c0_13], %18 {strides = array<i32>} : memref<1x128xf32, #tpu.memory_space<vmem>>, vector<1x128xf32>,
    return
  }
  func.func @transform_0(%arg0: i32) -> (i32, i32) {
    %c0_i32 = arith.constant 0 : i32
    %c0_i32_0 = arith.constant 0 : i32
    return %c0_i32, %arg0 : i32, i32
  }
  func.func @transform_1(%arg0: i32) -> (i32, i32) {
    %c0_i32 = arith.constant 0 : i32
    %c0_i32_0 = arith.constant 0 : i32
    %c0_i32_1 = arith.constant 0 : i32
    return %c0_i32, %c0_i32_0 : i32, i32
  }
  func.func @transform_2(%arg0: i32) -> (i32, i32) {
    %c0_i32 = arith.constant 0 : i32
    %c0_i32_0 = arith.constant 0 : i32
    %c0_i32_1 = arith.constant 0 : i32
    return %c0_i32, %c0_i32_0 : i32, i32
  }
  func.func @transform_3(%arg0: i32) -> (i32, i32) {
    %c0_i32 = arith.constant 0 : i32
    %c0_i32_0 = arith.constant 0 : i32
    %c0_i32_1 = arith.constant 0 : i32
    return %c0_i32, %c0_i32_0 : i32, i32
  }
  func.func @transform_4(%arg0: i32) -> (i32, i32) {
    %c0_i32 = arith.constant 0 : i32
    %c0_i32_0 = arith.constant 0 : i32
    %c0_i32_1 = arith.constant 0 : i32
    return %c0_i32, %c0_i32_0 : i32, i32
  }
  func.func @transform_5(%arg0: i32) -> (i32, i32) {
    %c0_i32 = arith.constant 0 : i32
    %c0_i32_0 = arith.constant 0 : i32
    return %c0_i32, %arg0 : i32, i32
  }
}

</mosaic_0001>

<bundles_post_ra>
// kernel: tpu_custom_call.1
= control target key start
LH: loop header
LB: loop body
LE: loop exit
PB: predicated region body
PF: predicated region fallthrough
CT: control target
= control target key end

     0   :  { %s698_s0 = inlined_call_operand.vmem [shape: bf16[4,128], index: 0, kind: input, shape index: {}]   ;;  %s699_s1 = inlined_call_operand.vmem [shape: bf16[128,4], index: 1, kind: input, shape index: {}]   ;;  %s700_s2 = inlined_call_operand.vmem [shape: f32[128,1], index: 2, kind: input, shape index: {}]   ;;  %s701_s3 = inlined_call_operand.vmem [shape: bf16[8,128], index: 3, kind: input, shape index: {}]   ;;  %s702_s4 = inlined_call_operand.<no memory space> [shape: f32[1,1], index: 4, kind: input, shape index: {}]   ;;  %s703_s5 = inlined_call_operand.hbm [shape: f32[1,128], index: 5, kind: output, shape index: {}]  }
   0x1   :  { %v10_v0 = vstv %s702_s4 }
   0x2   :  { %11 = vst [vmem:[#allocation2] sm:$0x1] %v10_v0 }
   0x3   :  { %v40_v1 = vld [vmem:[%s698_s0] sm:$0x3]  ;;  %vm106_vm0 = vcmask 1041408   ;;  %vm81_vm1 = vcmask 31744   ;;  %v519_v4 = vld [vmem:[%s699_s1 + $0x8] sm:$0xff]   ;;  %v520_v5 = vld [vmem:[%s699_s1 + $0x10] sm:$0xff]  }
   0x4   :  { %v518_v2 = vld [vmem:[%s699_s1] sm:$0xff]   ;;  %471 = vmatprep.subr.msk.bf16.mxu0 %vm106_vm0, %v40_v1  ;;  %v108_v3 = vsel %vm106_vm0, %v40_v1, 0  ;;  %v554_v6 = vmov 0   ;;  %v521_v7 = vld [vmem:[%s699_s1 + $0x18] sm:$0xff]   ;;  %v208_v9 = vld [vmem:[%s700_s2 + $0x8] sm:$0xff] }
   0x5   :  { %434 = vmatpush3.bf16.msra.mxu0 %v108_v3  ;;  %435 = vmatprep.mubr.msk.bf16.mxu0 %vm81_vm1, %v518_v2  ;;  %v207_v8 = vld [vmem:[%s700_s2] sm:$0xff]  ;;  %v209_v10 = vld [vmem:[%s700_s2 + $0x10] sm:$0xff]  ;;  %v210_v11 = vld [vmem:[%s700_s2 + $0x18] sm:$0xff] }
   0x6   :  { %476 = vset.pattern.permute.xlu0 %v554_v6  ;;  %487 = vset.pattern.permute.xlu1 %v554_v6  ;;  %v522_v12 = vld [vmem:[%s699_s1 + $0x20] sm:$0xff]   ;;  %v477_v13 = vpack.i.bf16 %v208_v9, %v207_v8  ;;  %v212_v15 = vld [vmem:[%s700_s2 + $0x28] sm:$0xff]  ;;  %v482_v16 = vpack.i.bf16 %v210_v11, %v209_v10  ;;  %v213_v18 = vld [vmem:[%s700_s2 + $0x30] sm:$0xff] }
   0x7   :  { %v211_v14 = vld [vmem:[%s700_s2 + $0x20] sm:$0xff]  ;;  %v214_v19 = vld [vmem:[%s700_s2 + $0x38] sm:$0xff]  ;;  %v216_v21 = vld [vmem:[%s700_s2 + $0x48] sm:$0xff] }
   0x8   :  { %436 = vmatmul.mubr.msk.bf16.vlgmr.msra.gmra.mrb[0].mxu0 %vm81_vm1, %v519_v4  ;;  %478 = vperm.xlu0 %476, %v477_v13   ;;  %v488_v17 = vpack.i.bf16 %v212_v15, %v211_v14  ;;  %v215_v20 = vld [vmem:[%s700_s2 + $0x40] sm:$0xff]  ;;  %v493_v22 = vpack.i.bf16 %v214_v19, %v213_v18 }
   0x9   :  { %439 = vmatprep.mubr.msk.bf16.mxu0 %vm81_vm1, %v520_v5 }
   0xa   :  { %489 = vperm.xlu1 %487, %v488_v17  }
  0x10   :  { %440 = vmatmul.mubr.msk.bf16.gmra.mrb[4].mxu0 %vm81_vm1, %v521_v7 }
  0x11   :  { %443 = vmatprep.mubr.msk.bf16.mxu0 %vm81_vm1, %v522_v12 }
  0x12   :  { %12 = vsyncpa [#allocation4], 0  ;;  %v217_v23 = vld [vmem:[%s700_s2 + $0x50] sm:$0xff]  ;;  %v218_v24 = vld [vmem:[%s700_s2 + $0x58] sm:$0xff]  ;;  %483 = vperm.xlu0 %476, %v482_v16   ;;  %v498_v25 = vpack.i.bf16 %v216_v21, %v215_v20  ;;  %494 = vperm.xlu1 %487, %v493_v22   ;;  %v555_v37 = vmov 0.0   ;;  %vm556_vm2 = vmmov 0  }
  0x13   :  { %v523_v26 = vld [vmem:[%s699_s1 + $0x28] sm:$0xff]   ;;  %v219_v27 = vld [vmem:[%s700_s2 + $0x60] sm:$0xff]  ;;  %v524_v29 = vld [vmem:[%s699_s1 + $0x30] sm:$0xff]   ;;  %v503_v30 = vpack.i.bf16 %v218_v24, %v217_v23  ;;  %451 = vmatprep.subr.bf16.mxu1 %v555_v37  ;;  %467 = vmatprep.mubr.msk.bf16.mxu1 %vm556_vm2, %v555_v37  ;;  %s557_s16 = smov [#allocation3]  }
  0x14   :  { %v220_v28 = vld [vmem:[%s700_s2 + $0x68] sm:$0xff]  ;;  %v221_v31 = vld [vmem:[%s700_s2 + $0x70] sm:$0xff]  ;;  %v222_v32 = vld [vmem:[%s700_s2 + $0x78] sm:$0xff]  ;;  %s391_s17 = sshll.u32 %s557_s16, 4  ;;  %s392_s17 = int_to_ptr.vmem [resolvable:$true] %s391_s17 }
  0x15   :  { %v508_v33 = vpack.i.bf16 %v220_v28, %v219_v27  ;;  %v513_v34 = vpack.i.bf16 %v222_v32, %v221_v31  ;;  %v525_v35 = vld [vmem:[%s699_s1 + $0x38] sm:$0xff]   ;;  %v368_v36 = vld [vmem:[#allocation2] sm:$0x1]  ;;  %s534_s18 = scalar_lea.vmem %s392_s17, 32  ;;  %p535_p1 = scmp.lt.s32.totalorder %s392_s17, %s392_s17 }
  0x16   :  { %499 = vperm.xlu0 %476, %v498_v25   ;;  %504 = vperm.xlu1 %487, %v503_v30  }
  0x18   :  { %444 = vmatmul.mubr.msk.bf16.gmra.mrb[8].mxu0 %vm81_vm1, %v523_v26 }
  0x19   :  { %447 = vmatprep.mubr.msk.bf16.mxu0 %vm81_vm1, %v524_v29 }
  0x1a   :  { %509 = vperm.xlu0 %476, %v508_v33   ;;  %514 = vperm.xlu1 %487, %v513_v34  }
  0x1e   :  { %371 = vperm.xlu0 %476, %v368_v36  }
  0x20   :  { %448 = vmatmul.mubr.msk.bf16.gmra.mrb[12].mxu0 %vm81_vm1, %v525_v35 }
  0x87   :  { %v479_v38 = vpop.permute.xlu0 %478 }
  0x88   :  { %v481_v42 = vunpack.i.h.bf16 %v479_v38  ;;  %v480_v43 = vunpack.i.l.bf16 %v479_v38 }
  0x89   :  { %v490_v44 = vpop.permute.xlu1 %489 }
  0x8a   :  { %v492_v58 = vunpack.i.h.bf16 %v490_v44  ;;  %v491_v59 = vunpack.i.l.bf16 %v490_v44 }
  0x91   :  { %v484_v39 = vpop.permute.xlu0 %483  ;;  %v495_v54 = vpop.permute.xlu1 %494 }
  0x92   :  { %v486_v40 = vunpack.i.h.bf16 %v484_v39  ;;  %v485_v41 = vunpack.i.l.bf16 %v484_v39  ;;  %v497_v56 = vunpack.i.h.bf16 %v495_v54  ;;  %v496_v57 = vunpack.i.l.bf16 %v495_v54  ;;  %v319_v39 = vld [vmem:[%s701_s3] sm:$0xf]  ;;  %s530_s3 = scalar_lea.vmem %s392_s17, 16 }
  0x93   :  { %p531_p0 = scmp.ne.s32.totalorder %s392_s17, %s530_s3  ;;  %p536_p2 = scmp.lt.s32.totalorder %s534_s18, %s530_s3 }
  0x95   :  { %v505_v6 = vpop.permute.xlu1 %504  ;;  %v500_v8 = vpop.permute.xlu0 %499  ;;  %p537_p3 = por %p536_p2, %p535_p1 }
  0x96   :  { %v507_v9 = vunpack.i.h.bf16 %v505_v6  ;;  %v506_v10 = vunpack.i.l.bf16 %v505_v6  ;;  %v502_v12 = vunpack.i.h.bf16 %v500_v8  ;;  %v501_v13 = vunpack.i.l.bf16 %v500_v8 }
  0x97   :  { %p538_p4 = pnand %p537_p3, %p531_p0 }
  0x99   :  { %v515_v21 = vpop.permute.xlu1 %514  ;;  %v510_v24 = vpop.permute.xlu0 %509 }
  0x9a   :  { %v517_v25 = vunpack.i.h.bf16 %v515_v21  ;;  %v516_v26 = vunpack.i.l.bf16 %v515_v21  ;;  %v512_v28 = vunpack.i.h.bf16 %v510_v24  ;;  %v511_v29 = vunpack.i.l.bf16 %v510_v24 }
  0xdb   :  { %v437_v45 = vpop.f32.mrb[0].mxu0 }
  0xdc   :  { %v144_v46 = vpop.f32.mrb[1].mxu0  ;;  %v305_v48 = vmax.f32 %v437_v45, %v485_v41 }
  0xdd   :  { %v438_v47 = vpop.f32.mrb[2].mxu0  ;;  %v303_v51 = vmax.f32 %v144_v46, %v480_v43  ;;  %v372_v43 = vpop.permute.xlu0 %371 }
  0xde   :  { %v306_v49 = vmax.f32 %v438_v47, %v486_v40  ;;  %v147_v50 = vpop.f32.mrb[3].mxu0  ;;  %v374_v40 = vlaneseq }
  0xdf   :  { %v304_v52 = vmax.f32 %v147_v50, %v481_v42 }
  0xe0   :  { %v321_v53 = vpack.c.bf16 %v306_v49, %v305_v48  ;;  %v375_v41 = vshrl.u32 %v374_v40, 7 }
  0xe1   :  { %v320_v55 = vpack.c.bf16 %v304_v52, %v303_v51 }
  0xe2   :  { %v376_v42 = vsub.s32 0, %v375_v41 }
  0xe3   :  { %v441_v60 = vpop.f32.mrb[4].mxu0  ;;  %452 = vmatpush3.bf16.msra.mxu1 %v320_v55 }
  0xe4   :  { %v160_v61 = vpop.f32.mrb[5].mxu0  ;;  %453 = vmatprep.subr.bf16.mxu1 %v555_v37  ;;  %v309_v63 = vmax.f32 %v441_v60, %v496_v57  ;;  %v377_v44 = vrot.slane %v372_v43, %v376_v42 }
  0xe5   :  { %v442_v62 = vpop.f32.mrb[6].mxu0  ;;  %v307_v2 = vmax.f32 %v160_v61, %v491_v59 }
  0xe6   :  { %v310_v0 = vmax.f32 %v442_v62, %v497_v56  ;;  %v163_v1 = vpop.f32.mrb[7].mxu0 }
  0xe7   :  { %v308_v3 = vmax.f32 %v163_v1, %v492_v58  ;;  %454 = vmatpush3.bf16.msra.mxu1 %v321_v53 }
  0xe8   :  { %v323_v4 = vpack.c.bf16 %v310_v0, %v309_v63  ;;  %455 = vmatprep.subr.bf16.mxu1 %v555_v37 }
  0xe9   :  { %v322_v5 = vpack.c.bf16 %v308_v3, %v307_v2 }
  0xeb   :  { %v445_v7 = vpop.f32.mrb[8].mxu0  ;;  %456 = vmatpush3.bf16.msra.mxu1 %v322_v5 }
  0xec   :  { %v176_v11 = vpop.f32.mrb[9].mxu0  ;;  %457 = vmatprep.subr.bf16.mxu1 %v555_v37  ;;  %v313_v15 = vmax.f32 %v445_v7, %v506_v10 }
  0xed   :  { %v446_v14 = vpop.f32.mrb[10].mxu0  ;;  %v311_v18 = vmax.f32 %v176_v11, %v501_v13 }
  0xee   :  { %v314_v16 = vmax.f32 %v446_v14, %v507_v9  ;;  %v179_v17 = vpop.f32.mrb[11].mxu0 }
  0xef   :  { %v312_v19 = vmax.f32 %v179_v17, %v502_v12  ;;  %458 = vmatpush3.bf16.msra.mxu1 %v323_v4 }
  0xf0   :  { %v325_v20 = vpack.c.bf16 %v314_v16, %v313_v15  ;;  %459 = vmatprep.subr.bf16.mxu1 %v555_v37 }
  0xf1   :  { %v324_v22 = vpack.c.bf16 %v312_v19, %v311_v18 }
  0xf3   :  { %v449_v23 = vpop.f32.mrb[12].mxu0  ;;  %460 = vmatpush3.bf16.msra.mxu1 %v324_v22 }
  0xf4   :  { %v192_v27 = vpop.f32.mrb[13].mxu0  ;;  %461 = vmatprep.subr.bf16.mxu1 %v555_v37  ;;  %v317_v31 = vmax.f32 %v449_v23, %v516_v26 }
  0xf5   :  { %v450_v30 = vpop.f32.mrb[14].mxu0  ;;  %v315_v34 = vmax.f32 %v192_v27, %v511_v29 }
  0xf6   :  { %v318_v32 = vmax.f32 %v450_v30, %v517_v25  ;;  %v195_v33 = vpop.f32.mrb[15].mxu0 }
  0xf7   :  { %v316_v35 = vmax.f32 %v195_v33, %v512_v28  ;;  %462 = vmatpush3.bf16.msra.mxu1 %v325_v20 }
  0xf8   :  { %v327_v36 = vpack.c.bf16 %v318_v32, %v317_v31  ;;  %463 = vmatprep.subr.bf16.mxu1 %v555_v37 }
  0xf9   :  { %v326_v38 = vpack.c.bf16 %v316_v35, %v315_v34 }
  0xfb   :  { %464 = vmatpush3.bf16.msra.mxu1 %v326_v38 }
  0xfc   :  { %465 = vmatprep.subr.bf16.mxu1 %v555_v37 }
  0xff   :  { %466 = vmatpush3.bf16.msra.mxu1 %v327_v36 }
 0x102   :  { %468 = vmatmul.mubr.bf16.vlgmr.msra.gmra.mrb[0].mxu1 %v319_v39 }
 0x1d5   :  { %v362_v45 = vpop.f32.mrb[0].mxu1 }
 0x1d6   :  { %v378_v46 = vadd.f32 %v377_v44, %v362_v45  ;;  %v469_v47 = vpop.f32.mrb[1].mxu1 }
 0x1d7   :  { %v365_v48 = vpop.f32.mrb[2].mxu1 }
 0x1d8   :  { %v379_v49 = vsub.f32 0.0, %v378_v46  ;;  %v470_v50 = vpop.f32.mrb[3].mxu1 }
 0x1da   :  { %v380_v51 = vmul.f32 1.442695, %v379_v49 }
 0x1dc   :  { %526 = vpow2.f32 %v380_v51 }
 0x1e6   :  { %v527_v37 = vpop.eup %526 }
 0x1e7   :  { %v382_v52 = vadd.f32 1.0, %v527_v37 }
 0x1e9   :  { %528 = vrcp.f32 %v382_v52 }
 0x1f3   :  { %v529_v53 = vpop.eup %528 }
 0x1f4   :  { %384 = vst [vmem:[#allocation3] sm:$0x1] %v529_v53 }
 0x1f5   :  { %541 = shalt.err (!%p538_p4)
}
 0x1f6   :  { %s542_s21 = scalar_lea.hbm %s703_s5, 16 }
 0x1f7   :  { %p543_p5 = scmp.ne.s32.totalorder %s703_s5, %s542_s21  ;;  %p546_p6 = scmp.lt.u32.totalorder %s542_s21, %s703_s5 }
 0x1f9   :  { %p548_p7 = pnand %p546_p6, %p543_p5 }
 0x1fb   :  { %551 = shalt.err (!%p548_p7)
}
 0x1fc   :  { %394 = dma.vmem_to_hbm [thread:$0]  %s392_s17, 16, %s703_s5, [#allocation4]  }
 0x1fd   :  { %552 = dma.done.wait [#allocation4], 16  }
 0x1fe   :  { %553 = vsyncadd [#allocation4], 4294967280 }
 0x1ff   :  { %398 = vsyncpa [#allocation4], 1 }

</bundles_post_ra>
